<compile_context>
chip_gen: v7x
topology: tpu7x:2x2x1
jax: 0.10.0
libtpu: 0.0.40
codegen_flags: <defaults>
</compile_context>

<pallas_src>
import functools

import jax
import jax.numpy as jnp
import numpy as np
from jax.experimental import pallas as pl
from jax.experimental.pallas import tpu as pltpu

EPS = 1e-5
LANE = 128
DEFAULT_TILE_M = 512            # mem-bound streaming sweet spot on v5e/v6e/v7x


def _round_up(x, m):
    return (x + m - 1) // m * m


@functools.lru_cache(maxsize=1)
def _vmem_limit_bytes():
    """~70% of per-core VMEM; falls back to a v7x-safe 44 MiB."""
    try:
        cap = int(pltpu.get_tpu_info().vmem_capacity_bytes)
    except Exception:                       # pragma: no cover - older jax / no TPU
        cap = 64 * 1024 * 1024
    return max(32 * 1024 * 1024, int(cap * 0.7))


def _compiler_params():
    return pltpu.CompilerParams(dimension_semantics=("parallel",),
                                vmem_limit_bytes=_vmem_limit_bytes())


# ----------------------------- Pallas kernels ------------------------------

def _gemm_stats_kernel(p_ref, w_ref, y_ref, s_ref):
    """Per row-tile: y = p @ w (f32 acc, bf16 store) + partial column stats."""
    acc = jnp.dot(p_ref[...], w_ref[...], preferred_element_type=jnp.float32)
    y_ref[...] = acc.astype(y_ref.dtype)
    csum = jnp.sum(acc, axis=0, keepdims=True)         # (1, C) partial sum
    csq = jnp.sum(acc * acc, axis=0, keepdims=True)    # (1, C) partial sum of squares
    s_ref[:, 0:1, :] = csum[None]
    s_ref[:, 1:2, :] = csq[None]


def _bn_apply_kernel(y_ref, sc_ref, sh_ref, o_ref, *, relu):
    y = y_ref[...].astype(jnp.float32) * sc_ref[...] + sh_ref[...]
    if relu:
        y = jnp.maximum(y, 0.0)
    o_ref[...] = y.astype(o_ref.dtype)


def _bn_apply_add_relu_kernel(y_ref, sc_ref, sh_ref, r_ref, o_ref):
    y = y_ref[...].astype(jnp.float32) * sc_ref[...] + sh_ref[...]
    y = y + r_ref[...].astype(jnp.float32)
    o_ref[...] = jnp.maximum(y, 0.0).astype(o_ref.dtype)


# ------------------------- pallas_call wrappers -----------------------------

def gemm_with_stats(p_bf16, w_bf16, *, tile_m):
    m_pad, k_pad = p_bf16.shape
    c_pad = w_bf16.shape[1]
    n_tiles = m_pad // tile_m
    flops = 2 * m_pad * k_pad * c_pad
    bytes_accessed = (int(p_bf16.size) * 2 + int(w_bf16.size) * 2
                      + m_pad * c_pad * 2 + n_tiles * 2 * c_pad * 4)
    return pl.pallas_call(
        _gemm_stats_kernel,
        out_shape=(jax.ShapeDtypeStruct((m_pad, c_pad), jnp.bfloat16),
                   jax.ShapeDtypeStruct((n_tiles, 2, c_pad), jnp.float32)),
        grid=(n_tiles,),
        in_specs=[pl.BlockSpec((tile_m, k_pad), lambda i: (i, 0)),
                  pl.BlockSpec((k_pad, c_pad), lambda i: (0, 0))],   # weight resident
        out_specs=(pl.BlockSpec((tile_m, c_pad), lambda i: (i, 0)),
                   pl.BlockSpec((1, 2, c_pad), lambda i: (i, 0, 0))),
        compiler_params=_compiler_params(),
        cost_estimate=pl.CostEstimate(flops=flops, transcendentals=0,
                                      bytes_accessed=bytes_accessed),
    )(p_bf16, w_bf16)


def bn_apply(y, scale, shift, *, tile_m, relu, residual=None,
             out_dtype=jnp.float32):
    m_pad, c_pad = y.shape
    n_tiles = m_pad // tile_m
    in_specs = [pl.BlockSpec((tile_m, c_pad), lambda i: (i, 0)),
                pl.BlockSpec((1, c_pad), lambda i: (0, 0)),
                pl.BlockSpec((1, c_pad), lambda i: (0, 0))]
    args = [y, scale, shift]
    flops = 3 * m_pad * c_pad
    bytes_accessed = (int(y.size) * y.dtype.itemsize + 2 * c_pad * 4
                      + m_pad * c_pad * jnp.dtype(out_dtype).itemsize)
    if residual is None:
        kern = functools.partial(_bn_apply_kernel, relu=relu)
    else:
        kern = _bn_apply_add_relu_kernel
        in_specs.append(pl.BlockSpec((tile_m, c_pad), lambda i: (i, 0)))
        args.append(residual)
        flops += 2 * m_pad * c_pad
        bytes_accessed += int(residual.size) * residual.dtype.itemsize
    return pl.pallas_call(
        kern,
        out_shape=jax.ShapeDtypeStruct((m_pad, c_pad), out_dtype),
        grid=(n_tiles,),
        in_specs=in_specs,
        out_specs=pl.BlockSpec((tile_m, c_pad), lambda i: (i, 0)),
        compiler_params=_compiler_params(),
        cost_estimate=pl.CostEstimate(flops=flops, transcendentals=0,
                                      bytes_accessed=bytes_accessed),
    )(*args)


# ------------------------------- JAX glue ----------------------------------

def im2col(x_nhwc, ksize, stride, pad):
    """Extract conv patches -> (N*Ho*Wo, ksize*ksize*C). Keeps input dtype."""
    N, H, W, C = x_nhwc.shape
    xp = jnp.pad(x_nhwc, ((0, 0), (pad, pad), (pad, pad), (0, 0)))
    Ho = (H + 2 * pad - ksize) // stride + 1
    Wo = (W + 2 * pad - ksize) // stride + 1
    cols = []
    for kh in range(ksize):
        for kw in range(ksize):
            cols.append(xp[:, kh:kh + stride * (Ho - 1) + 1:stride,
                           kw:kw + stride * (Wo - 1) + 1:stride, :])
    patches = jnp.stack(cols, axis=3)          # (N, Ho, Wo, k*k, C)
    return patches.reshape(N * Ho * Wo, ksize * ksize * C), (N, Ho, Wo)


def _w_to_gemm(w_oihw):
    """PyTorch conv weight (Cout, Cin, kh, kw) -> (kh*kw*Cin, Cout)."""
    cout = w_oihw.shape[0]
    return jnp.transpose(w_oihw, (2, 3, 1, 0)).reshape(-1, cout)


def _choose_tile_m(m):
    """Multiple of 16 (bf16 sublane packing), <= DEFAULT_TILE_M, and small
    enough that the grid has >= 2 steps when M allows (v7x megacore)."""
    half = _round_up(max((m + 1) // 2, 16), 16)
    return max(16, min(DEFAULT_TILE_M, half))


def _stats_to_scale_shift(stats, gamma_pad, beta_pad, m_total):
    """Combine per-tile stats (T, 2, C) -> BN scale/shift of shape (1, C)."""
    total = jnp.sum(stats[:, 0, :], axis=0)          # (C,)
    total_sq = jnp.sum(stats[:, 1, :], axis=0)       # (C,)
    mean = total / m_total
    var = total_sq / m_total - mean * mean           # biased var (BN training mode)
    scale = gamma_pad * jax.lax.rsqrt(var + EPS)     # (1, C)
    shift = beta_pad - mean * scale                  # (1, C)
    return scale.astype(jnp.float32), shift.astype(jnp.float32)


def conv_bn_act(x_nhwc, w_oihw, gamma, beta, *, stride, pad, relu,
                residual_nhwc=None, out_dtype=jnp.float32):
    """conv (no bias) -> training-mode BN -> [+residual] -> [ReLU]; NHWC in/out."""
    N, H, W, Cin = x_nhwc.shape
    Cout, _, ksize, _ = w_oihw.shape

    # bf16 BEFORE im2col so the 9x patch materialization moves half the bytes.
    p, (_, Ho, Wo) = im2col(x_nhwc.astype(jnp.bfloat16), ksize, stride, pad)
    M, K = p.shape
    k_pad = _round_up(K, LANE)
    c_pad = _round_up(Cout, LANE)
    tile_m = _choose_tile_m(M)
    m_pad = _round_up(M, tile_m)

    # Zero-padded, lane-dense GEMM operands (zeros do not perturb the dot
    # product; BN stats divide by the real M so zero rows are harmless).
    p_pad = jnp.pad(p, ((0, m_pad - M), (0, k_pad - K)))
    w_pad = jnp.pad(_w_to_gemm(w_oihw),
                    ((0, k_pad - K), (0, c_pad - Cout))).astype(jnp.bfloat16)
    g_pad = jnp.pad(gamma.reshape(1, Cout).astype(jnp.float32),
                    ((0, 0), (0, c_pad - Cout)), constant_values=1.0)
    b_pad = jnp.pad(beta.reshape(1, Cout).astype(jnp.float32),
                    ((0, 0), (0, c_pad - Cout)))

    y, stats = gemm_with_stats(p_pad, w_pad, tile_m=tile_m)
    scale, shift = _stats_to_scale_shift(stats, g_pad, b_pad, float(M))

    r_pad = None
    if residual_nhwc is not None:
        r = residual_nhwc.reshape(M, Cout).astype(jnp.bfloat16)
        r_pad = jnp.pad(r, ((0, m_pad - M), (0, c_pad - Cout)))

    out = bn_apply(y, scale, shift, tile_m=tile_m, relu=relu,
                   residual=r_pad, out_dtype=out_dtype)
    return out[:M, :Cout].reshape(N, Ho, Wo, Cout)


@functools.partial(jax.jit, static_argnames=("stride", "downsample_flag"))
def basic_block_forward(x_nchw, params, *, stride, downsample_flag):
    x = jnp.transpose(x_nchw, (0, 2, 3, 1)).astype(jnp.float32)   # NCHW -> NHWC

    # conv1 (3x3, stride, pad 1) + bn1 + relu ; bf16 output (feeds conv2 GEMM)
    out1 = conv_bn_act(x, params["conv1_w"], params["bn1_g"], params["bn1_b"],
                       stride=stride, pad=1, relu=True, out_dtype=jnp.bfloat16)

    # residual branch
    if downsample_flag:
        # 1x1 conv, stride 2 (hardcoded in the PyTorch module) + bn ; bf16 output
        res = conv_bn_act(x, params["down_w"], params["bnd_g"], params["bnd_b"],
                          stride=2, pad=0, relu=False, out_dtype=jnp.bfloat16)
    else:
        res = x

    # conv2 (3x3, stride 1, pad 1) + bn2 + residual add + relu (fused epilogue)
    out = conv_bn_act(out1, params["conv2_w"], params["bn2_g"], params["bn2_b"],
                      stride=1, pad=1, relu=True, residual_nhwc=res,
                      out_dtype=jnp.float32)
    return jnp.transpose(out, (0, 3, 1, 2))   # back to NCHW


# --------------------------- pure-JAX reference -----------------------------

def _ref_conv(x_nhwc, w_oihw, stride, pad):
    return jax.lax.conv_general_dilated(
        x_nhwc, jnp.transpose(w_oihw, (2, 3, 1, 0)),
        (stride, stride), [(pad, pad), (pad, pad)],
        dimension_numbers=("NHWC", "HWIO", "NHWC"))


def _ref_bn(x, g, b):
    mean = x.mean(axis=(0, 1, 2), keepdims=True)
    var = ((x - mean) ** 2).mean(axis=(0, 1, 2), keepdims=True)
    return (x - mean) * jax.lax.rsqrt(var + EPS) * g.reshape(1, 1, 1, -1) \
        + b.reshape(1, 1, 1, -1)


def basic_block_reference(x_nchw, params, *, stride, downsample_flag):
    x = jnp.transpose(x_nchw, (0, 2, 3, 1))
    out = jax.nn.relu(_ref_bn(_ref_conv(x, params["conv1_w"], stride, 1),
                              params["bn1_g"], params["bn1_b"]))
    out = _ref_bn(_ref_conv(out, params["conv2_w"], 1, 1),
                  params["bn2_g"], params["bn2_b"])
    if downsample_flag:
        res = _ref_bn(_ref_conv(x, params["down_w"], 2, 0),
                      params["bnd_g"], params["bnd_b"])
    else:
        res = x
    out = jax.nn.relu(out + res)
    return jnp.transpose(out, (0, 3, 1, 2))


# --------------------------------- main -------------------------------------

def _make_params(key, cin, cout, downsample_flag):
    ks = jax.random.split(key, 8)
    params = {
        "conv1_w": 0.1 * jax.random.normal(ks[0], (cout, cin, 3, 3), jnp.float32),
        "bn1_g": (1.0 + 0.1 * jax.random.normal(ks[1], (1, cout), jnp.float32)),
        "bn1_b": 0.1 * jax.random.normal(ks[2], (1, cout), jnp.float32),
        "conv2_w": 0.1 * jax.random.normal(ks[3], (cout, cout, 3, 3), jnp.float32),
        "bn2_g": (1.0 + 0.1 * jax.random.normal(ks[4], (1, cout), jnp.float32)),
        "bn2_b": 0.1 * jax.random.normal(ks[5], (1, cout), jnp.float32),
    }
    if downsample_flag:
        params["down_w"] = 0.1 * jax.random.normal(ks[6], (cout, cin, 1, 1), jnp.float32)
        kd = jax.random.split(ks[7], 2)
        params["bnd_g"] = 1.0 + 0.1 * jax.random.normal(kd[0], (1, cout), jnp.float32)
        params["bnd_b"] = 0.1 * jax.random.normal(kd[1], (1, cout), jnp.float32)
    return params


if __name__ == "__main__":
    key = jax.random.PRNGKey(0)

    # bf16 MXU operands + bf16 inter-pass intermediates (two chained convs)
    # -> slightly larger tolerance floor than a pure-f32 pipeline.
    RTOL, ATOL = 3e-2, 6e-2

    # Config A: in=4, out=8, stride=2, downsample branch active.
    kx, kp, kx2, kp2 = jax.random.split(key, 4)
    x_a = jax.random.normal(kx, (2, 4, 16, 16), jnp.float32)       # NCHW
    params_a = _make_params(kp, 4, 8, downsample_flag=True)
    out_a = basic_block_forward(x_a, params_a, stride=2, downsample_flag=True)
    out_a = jax.block_until_ready(out_a)
    ref_a = basic_block_reference(x_a, params_a, stride=2, downsample_flag=True)
    assert out_a.shape == (2, 8, 8, 8)
    np.testing.assert_allclose(np.asarray(out_a), np.asarray(ref_a),
                               rtol=RTOL, atol=ATOL)

    # Config B: in=out=8, stride=1, identity residual (M=512 -> 2 row tiles,
    # exercises the multi-tile partial-stat path and megacore-friendly grid).
    x_b = jax.random.normal(kx2, (2, 8, 16, 16), jnp.float32)      # NCHW
    params_b = _make_params(kp2, 8, 8, downsample_flag=False)
    out_b = basic_block_forward(x_b, params_b, stride=1, downsample_flag=False)
    out_b = jax.block_until_ready(out_b)
    ref_b = basic_block_reference(x_b, params_b, stride=1, downsample_flag=False)
    assert out_b.shape == (2, 8, 16, 16)
    np.testing.assert_allclose(np.asarray(out_b), np.asarray(ref_b),
                               rtol=RTOL, atol=ATOL)

    print("KERNEL_OK")
</pallas_src>

<mosaic_0001>
module attributes {stable_mosaic.version = 11 : i64} {
  func.func @_gemm_stats_kernel(%arg0: i32, %arg1: memref<64x128xbf16, #tpu.memory_space<vmem>>, %arg2: memref<128x128xbf16, #tpu.memory_space<vmem>>, %arg3: memref<64x128xbf16, #tpu.memory_space<vmem>>, %arg4: memref<1x2x128xf32, #tpu.memory_space<vmem>>) attributes {dimension_semantics = [#tpu.dimension_semantics<parallel>], iteration_bounds = array<i64: 2>, scalar_prefetch = 0 : i64, scratch_operands = 0 : i64, tpu.core_type = #tpu.core_type<tc>, window_params = [{transform_indices = @transform_0, window_bounds = array<i64: 64, 128>}, {pipeline_mode = #tpu.pipeline_mode<synchronous>, transform_indices = @transform_1, window_bounds = array<i64: 128, 128>}, {transform_indices = @transform_2, window_bounds = array<i64: 64, 128>}, {transform_indices = @transform_3, window_bounds = array<i64: 1, 2, 128>}]} {
    %c0 = arith.constant 0 : index
    %c0_0 = arith.constant 0 : index
    %0 = vector.load %arg1[%c0, %c0_0] : memref<64x128xbf16, #tpu.memory_space<vmem>>, vector<64x128xbf16>
    %c0_1 = arith.constant 0 : index
    %c0_2 = arith.constant 0 : index
    %1 = vector.load %arg2[%c0_1, %c0_2] : memref<128x128xbf16, #tpu.memory_space<vmem>>, vector<128x128xbf16>
    %cst = arith.constant dense<0.000000e+00> : vector<64x128xf32>
    %2 = tpu.matmul %0, %1, %cst {dimension_numbers = #tpu.dot_dimension_numbers<[1], [0], [0], [1], [0, 0, 1, 1], [], []>} : vector<64x128xbf16>, vector<128x128xbf16>, vector<64x128xf32> -> vector<64x128xf32>
    %3 = arith.truncf %2 : vector<64x128xf32> to vector<64x128xbf16>
    %c0_3 = arith.constant 0 : index
    %c0_4 = arith.constant 0 : index
    %4 = vector.load %arg3[%c0_3, %c0_4] : memref<64x128xbf16, #tpu.memory_space<vmem>>, vector<64x128xbf16>
    tpu.vector_store %arg3[%c0_3, %c0_4], %3 {strides = array<i32>} : memref<64x128xbf16, #tpu.memory_space<vmem>>, vector<64x128xbf16>,
    %cst_5 = arith.constant dense<0.000000e+00> : vector<128xf32>
    %5 = vector.multi_reduction <add>, %2, %cst_5 [0] : vector<64x128xf32> to vector<128xf32>
    %6 = vector.shape_cast %5 : vector<128xf32> to vector<1x128xf32>
    %7 = arith.mulf %2, %2 : vector<64x128xf32>
    %cst_6 = arith.constant dense<0.000000e+00> : vector<128xf32>
    %8 = vector.multi_reduction <add>, %7, %cst_6 [0] : vector<64x128xf32> to vector<128xf32>
    %9 = vector.shape_cast %8 : vector<128xf32> to vector<1x128xf32>
    %10 = vector.shape_cast %6 : vector<1x128xf32> to vector<1x1x128xf32>
    %c0_7 = arith.constant 0 : index
    %c0_8 = arith.constant 0 : index
    %c0_9 = arith.constant 0 : index
    %11 = vector.load %arg4[%c0_7, %c0_8, %c0_9] : memref<1x2x128xf32, #tpu.memory_space<vmem>>, vector<1x1x128xf32>
    tpu.vector_store %arg4[%c0_7, %c0_8, %c0_9], %10 {strides = array<i32>} : memref<1x2x128xf32, #tpu.memory_space<vmem>>, vector<1x1x128xf32>,
    %12 = vector.shape_cast %9 : vector<1x128xf32> to vector<1x1x128xf32>
    %c0_10 = arith.constant 0 : index
    %c1 = arith.constant 1 : index
    %c0_11 = arith.constant 0 : index
    %13 = vector.load %arg4[%c0_10, %c1, %c0_11] : memref<1x2x128xf32, #tpu.memory_space<vmem>>, vector<1x1x128xf32>
    tpu.vector_store %arg4[%c0_10, %c1, %c0_11], %12 {strides = array<i32>} : memref<1x2x128xf32, #tpu.memory_space<vmem>>, vector<1x1x128xf32>,
    return
  }
  func.func @transform_0(%arg0: i32) -> (i32, i32) {
    %c0_i32 = arith.constant 0 : i32
    %c0_i32_0 = arith.constant 0 : i32
    return %arg0, %c0_i32 : i32, i32
  }
  func.func @transform_1(%arg0: i32) -> (i32, i32) {
    %c0_i32 = arith.constant 0 : i32
    %c0_i32_0 = arith.constant 0 : i32
    %c0_i32_1 = arith.constant 0 : i32
    return %c0_i32, %c0_i32_0 : i32, i32
  }
  func.func @transform_2(%arg0: i32) -> (i32, i32) {
    %c0_i32 = arith.constant 0 : i32
    %c0_i32_0 = arith.constant 0 : i32
    return %arg0, %c0_i32 : i32, i32
  }
  func.func @transform_3(%arg0: i32) -> (i32, i32, i32) {
    %c0_i32 = arith.constant 0 : i32
    %c0_i32_0 = arith.constant 0 : i32
    %c0_i32_1 = arith.constant 0 : i32
    return %arg0, %c0_i32, %c0_i32_0 : i32, i32, i32
  }
}

module attributes {stable_mosaic.version = 11 : i64} {
  func.func @_bn_apply_kernel(%arg0: i32, %arg1: memref<64x128xbf16, #tpu.memory_space<vmem>>, %arg2: memref<1x128xf32, #tpu.memory_space<vmem>>, %arg3: memref<1x128xf32, #tpu.memory_space<vmem>>, %arg4: memref<64x128xbf16, #tpu.memory_space<vmem>>) attributes {dimension_semantics = [#tpu.dimension_semantics<parallel>], iteration_bounds = array<i64: 2>, scalar_prefetch = 0 : i64, scratch_operands = 0 : i64, tpu.core_type = #tpu.core_type<tc>, window_params = [{transform_indices = @transform_0, window_bounds = array<i64: 64, 128>}, {pipeline_mode = #tpu.pipeline_mode<synchronous>, transform_indices = @transform_1, window_bounds = array<i64: 1, 128>}, {pipeline_mode = #tpu.pipeline_mode<synchronous>, transform_indices = @transform_2, window_bounds = array<i64: 1, 128>}, {transform_indices = @transform_3, window_bounds = array<i64: 64, 128>}]} {
    %c0 = arith.constant 0 : index
    %c0_0 = arith.constant 0 : index
    %0 = vector.load %arg1[%c0, %c0_0] : memref<64x128xbf16, #tpu.memory_space<vmem>>, vector<64x128xbf16>
    %1 = arith.extf %0 : vector<64x128xbf16> to vector<64x128xf32>
    %c0_1 = arith.constant 0 : index
    %c0_2 = arith.constant 0 : index
    %2 = vector.load %arg2[%c0_1, %c0_2] : memref<1x128xf32, #tpu.memory_space<vmem>>, vector<1x128xf32>
    %3 = vector.broadcast %2 : vector<1x128xf32> to vector<64x128xf32>
    %4 = arith.mulf %1, %3 : vector<64x128xf32>
    %c0_3 = arith.constant 0 : index
    %c0_4 = arith.constant 0 : index
    %5 = vector.load %arg3[%c0_3, %c0_4] : memref<1x128xf32, #tpu.memory_space<vmem>>, vector<1x128xf32>
    %6 = vector.broadcast %5 : vector<1x128xf32> to vector<64x128xf32>
    %7 = arith.addf %4, %6 : vector<64x128xf32>
    %cst = arith.constant 0.000000e+00 : f32
    %8 = vector.broadcast %cst : f32 to vector<64x128xf32>
    %9 = arith.maximumf %7, %8 : vector<64x128xf32>
    %10 = arith.truncf %9 : vector<64x128xf32> to vector<64x128xbf16>
    %c0_5 = arith.constant 0 : index
    %c0_6 = arith.constant 0 : index
    %11 = vector.load %arg4[%c0_5, %c0_6] : memref<64x128xbf16, #tpu.memory_space<vmem>>, vector<64x128xbf16>
    tpu.vector_store %arg4[%c0_5, %c0_6], %10 {strides = array<i32>} : memref<64x128xbf16, #tpu.memory_space<vmem>>, vector<64x128xbf16>,
    return
  }
  func.func @transform_0(%arg0: i32) -> (i32, i32) {
    %c0_i32 = arith.constant 0 : i32
    %c0_i32_0 = arith.constant 0 : i32
    return %arg0, %c0_i32 : i32, i32
  }
  func.func @transform_1(%arg0: i32) -> (i32, i32) {
    %c0_i32 = arith.constant 0 : i32
    %c0_i32_0 = arith.constant 0 : i32
    %c0_i32_1 = arith.constant 0 : i32
    return %c0_i32, %c0_i32_0 : i32, i32
  }
  func.func @transform_2(%arg0: i32) -> (i32, i32) {
    %c0_i32 = arith.constant 0 : i32
    %c0_i32_0 = arith.constant 0 : i32
    %c0_i32_1 = arith.constant 0 : i32
    return %c0_i32, %c0_i32_0 : i32, i32
  }
  func.func @transform_3(%arg0: i32) -> (i32, i32) {
    %c0_i32 = arith.constant 0 : i32
    %c0_i32_0 = arith.constant 0 : i32
    return %arg0, %c0_i32 : i32, i32
  }
}

module attributes {stable_mosaic.version = 11 : i64} {
  func.func @_bn_apply_kernel(%arg0: i32, %arg1: memref<64x128xbf16, #tpu.memory_space<vmem>>, %arg2: memref<1x128xf32, #tpu.memory_space<vmem>>, %arg3: memref<1x128xf32, #tpu.memory_space<vmem>>, %arg4: memref<64x128xbf16, #tpu.memory_space<vmem>>) attributes {dimension_semantics = [#tpu.dimension_semantics<parallel>], iteration_bounds = array<i64: 2>, scalar_prefetch = 0 : i64, scratch_operands = 0 : i64, tpu.core_type = #tpu.core_type<tc>, window_params = [{transform_indices = @transform_0, window_bounds = array<i64: 64, 128>}, {pipeline_mode = #tpu.pipeline_mode<synchronous>, transform_indices = @transform_1, window_bounds = array<i64: 1, 128>}, {pipeline_mode = #tpu.pipeline_mode<synchronous>, transform_indices = @transform_2, window_bounds = array<i64: 1, 128>}, {transform_indices = @transform_3, window_bounds = array<i64: 64, 128>}]} {
    %c0 = arith.constant 0 : index
    %c0_0 = arith.constant 0 : index
    %0 = vector.load %arg1[%c0, %c0_0] : memref<64x128xbf16, #tpu.memory_space<vmem>>, vector<64x128xbf16>
    %1 = arith.extf %0 : vector<64x128xbf16> to vector<64x128xf32>
    %c0_1 = arith.constant 0 : index
    %c0_2 = arith.constant 0 : index
    %2 = vector.load %arg2[%c0_1, %c0_2] : memref<1x128xf32, #tpu.memory_space<vmem>>, vector<1x128xf32>
    %3 = vector.broadcast %2 : vector<1x128xf32> to vector<64x128xf32>
    %4 = arith.mulf %1, %3 : vector<64x128xf32>
    %c0_3 = arith.constant 0 : index
    %c0_4 = arith.constant 0 : index
    %5 = vector.load %arg3[%c0_3, %c0_4] : memref<1x128xf32, #tpu.memory_space<vmem>>, vector<1x128xf32>
    %6 = vector.broadcast %5 : vector<1x128xf32> to vector<64x128xf32>
    %7 = arith.addf %4, %6 : vector<64x128xf32>
    %8 = arith.truncf %7 : vector<64x128xf32> to vector<64x128xbf16>
    %c0_5 = arith.constant 0 : index
    %c0_6 = arith.constant 0 : index
    %9 = vector.load %arg4[%c0_5, %c0_6] : memref<64x128xbf16, #tpu.memory_space<vmem>>, vector<64x128xbf16>
    tpu.vector_store %arg4[%c0_5, %c0_6], %8 {strides = array<i32>} : memref<64x128xbf16, #tpu.memory_space<vmem>>, vector<64x128xbf16>,
    return
  }
  func.func @transform_0(%arg0: i32) -> (i32, i32) {
    %c0_i32 = arith.constant 0 : i32
    %c0_i32_0 = arith.constant 0 : i32
    return %arg0, %c0_i32 : i32, i32
  }
  func.func @transform_1(%arg0: i32) -> (i32, i32) {
    %c0_i32 = arith.constant 0 : i32
    %c0_i32_0 = arith.constant 0 : i32
    %c0_i32_1 = arith.constant 0 : i32
    return %c0_i32, %c0_i32_0 : i32, i32
  }
  func.func @transform_2(%arg0: i32) -> (i32, i32) {
    %c0_i32 = arith.constant 0 : i32
    %c0_i32_0 = arith.constant 0 : i32
    %c0_i32_1 = arith.constant 0 : i32
    return %c0_i32, %c0_i32_0 : i32, i32
  }
  func.func @transform_3(%arg0: i32) -> (i32, i32) {
    %c0_i32 = arith.constant 0 : i32
    %c0_i32_0 = arith.constant 0 : i32
    return %arg0, %c0_i32 : i32, i32
  }
}

module attributes {stable_mosaic.version = 11 : i64} {
  func.func @_bn_apply_add_relu_kernel(%arg0: i32, %arg1: memref<64x128xbf16, #tpu.memory_space<vmem>>, %arg2: memref<1x128xf32, #tpu.memory_space<vmem>>, %arg3: memref<1x128xf32, #tpu.memory_space<vmem>>, %arg4: memref<64x128xbf16, #tpu.memory_space<vmem>>, %arg5: memref<64x128xf32, #tpu.memory_space<vmem>>) attributes {dimension_semantics = [#tpu.dimension_semantics<parallel>], iteration_bounds = array<i64: 2>, scalar_prefetch = 0 : i64, scratch_operands = 0 : i64, tpu.core_type = #tpu.core_type<tc>, window_params = [{transform_indices = @transform_0, window_bounds = array<i64: 64, 128>}, {pipeline_mode = #tpu.pipeline_mode<synchronous>, transform_indices = @transform_1, window_bounds = array<i64: 1, 128>}, {pipeline_mode = #tpu.pipeline_mode<synchronous>, transform_indices = @transform_2, window_bounds = array<i64: 1, 128>}, {transform_indices = @transform_3, window_bounds = array<i64: 64, 128>}, {transform_indices = @transform_4, window_bounds = array<i64: 64, 128>}]} {
    %c0 = arith.constant 0 : index
    %c0_0 = arith.constant 0 : index
    %0 = vector.load %arg1[%c0, %c0_0] : memref<64x128xbf16, #tpu.memory_space<vmem>>, vector<64x128xbf16>
    %1 = arith.extf %0 : vector<64x128xbf16> to vector<64x128xf32>
    %c0_1 = arith.constant 0 : index
    %c0_2 = arith.constant 0 : index
    %2 = vector.load %arg2[%c0_1, %c0_2] : memref<1x128xf32, #tpu.memory_space<vmem>>, vector<1x128xf32>
    %3 = vector.broadcast %2 : vector<1x128xf32> to vector<64x128xf32>
    %4 = arith.mulf %1, %3 : vector<64x128xf32>
    %c0_3 = arith.constant 0 : index
    %c0_4 = arith.constant 0 : index
    %5 = vector.load %arg3[%c0_3, %c0_4] : memref<1x128xf32, #tpu.memory_space<vmem>>, vector<1x128xf32>
    %6 = vector.broadcast %5 : vector<1x128xf32> to vector<64x128xf32>
    %7 = arith.addf %4, %6 : vector<64x128xf32>
    %c0_5 = arith.constant 0 : index
    %c0_6 = arith.constant 0 : index
    %8 = vector.load %arg4[%c0_5, %c0_6] : memref<64x128xbf16, #tpu.memory_space<vmem>>, vector<64x128xbf16>
    %9 = arith.extf %8 : vector<64x128xbf16> to vector<64x128xf32>
    %10 = arith.addf %7, %9 : vector<64x128xf32>
    %cst = arith.constant 0.000000e+00 : f32
    %11 = vector.broadcast %cst : f32 to vector<64x128xf32>
    %12 = arith.maximumf %10, %11 : vector<64x128xf32>
    %c0_7 = arith.constant 0 : index
    %c0_8 = arith.constant 0 : index
    %13 = vector.load %arg5[%c0_7, %c0_8] : memref<64x128xf32, #tpu.memory_space<vmem>>, vector<64x128xf32>
    tpu.vector_store %arg5[%c0_7, %c0_8], %12 {strides = array<i32>} : memref<64x128xf32, #tpu.memory_space<vmem>>, vector<64x128xf32>,
    return
  }
  func.func @transform_0(%arg0: i32) -> (i32, i32) {
    %c0_i32 = arith.constant 0 : i32
    %c0_i32_0 = arith.constant 0 : i32
    return %arg0, %c0_i32 : i32, i32
  }
  func.func @transform_1(%arg0: i32) -> (i32, i32) {
    %c0_i32 = arith.constant 0 : i32
    %c0_i32_0 = arith.constant 0 : i32
    %c0_i32_1 = arith.constant 0 : i32
    return %c0_i32, %c0_i32_0 : i32, i32
  }
  func.func @transform_2(%arg0: i32) -> (i32, i32) {
    %c0_i32 = arith.constant 0 : i32
    %c0_i32_0 = arith.constant 0 : i32
    %c0_i32_1 = arith.constant 0 : i32
    return %c0_i32, %c0_i32_0 : i32, i32
  }
  func.func @transform_3(%arg0: i32) -> (i32, i32) {
    %c0_i32 = arith.constant 0 : i32
    %c0_i32_0 = arith.constant 0 : i32
    return %arg0, %c0_i32 : i32, i32
  }
  func.func @transform_4(%arg0: i32) -> (i32, i32) {
    %c0_i32 = arith.constant 0 : i32
    %c0_i32_0 = arith.constant 0 : i32
    return %arg0, %c0_i32 : i32, i32
  }
}

</mosaic_0001>

<bundles_post_ra>
// kernel: basic_block_forward.7
= control target key start
LH: loop header
LB: loop body
LE: loop exit
PB: predicated region body
PF: predicated region fallthrough
CT: control target
= control target key end

     0   :  { %s431_s12 = smov 0   ;;  %s461_s0 = inlined_call_operand.vmem [shape: bf16[128,128], index: 0, kind: input, shape index: {}]   ;;  %s462_s1 = inlined_call_operand.vmem [shape: f32[1,128], index: 1, kind: input, shape index: {}]   ;;  %s463_s2 = inlined_call_operand.vmem [shape: f32[1,128], index: 2, kind: input, shape index: {}]   ;;  %s464_s3 = inlined_call_operand.vmem [shape: bf16[128,128], index: 3, kind: output, shape index: {}]  }
   0x1 LB: > { %s324_s13 = sadd.s32 4294967295, %s409_s12   ;;  %p328_p0 = scmp.ge.s32.totalorder %s409_s12, 1  ;;  %s409_s12 = sphi %s431_s12, %s13_s12  }
   0x2   : > { %p138_p1 = scmp.lt.s32.totalorder %s409_s12, 3 }
   0x4   : > { %p139_p2 = pnand %p328_p0, %p138_p1 }
   0x5   : > { %s329_s14 = sshll.u32 (!%p139_p2), %s324_s13, 3  ;;  %v333_v0 = vld [vmem:[%s462_s1] ss:$0 sm:$0xff] (!%p139_p2) }
   0x6   : > { %142 = sbr.rel (%p139_p2) target bundleno = 29 (0x1d), region = 32  ;;  %p163_p3 = scmp.lt.s32.totalorder (!%p139_p2), %s329_s14, 15  ;;  %v334_v9 = vld [vmem:[%s463_s2] ss:$0 sm:$0xff] (!%p139_p2) }
   0xd   : > { %s466_s14 = smov (!%p163_p3, %s329_s14), 15 }
   0xe   : > { %s330_s15 = sshll.u32 %s466_s14, 2 }
   0xf   : > { %s166_s18 = scalar_lea.vmem %s461_s0, %s330_s15  ;;  %s172_s25 = scalar_lea.vmem %s464_s3, %s330_s15 }
  0x10   : > { %v354_v1 = vld [vmem:[%s166_s18] sm:$0xff]   ;;  %v389_v2 = vld [vmem:[%s166_s18 + $0x8] sm:$0xff]   ;;  %v390_v3 = vld [vmem:[%s166_s18 + $0x10] sm:$0xff]  }
  0x11   : > { %v355_v4 = vunpack.c.l.bf16 %v354_v1  ;;  %v356_v5 = vunpack.c.h.bf16 %v354_v1  ;;  %v359_v6 = vunpack.c.l.bf16 %v389_v2  ;;  %v360_v7 = vunpack.c.h.bf16 %v389_v2  ;;  %v391_v8 = vld [vmem:[%s166_s18 + $0x18] sm:$0xff]  }
  0x12   : > { %v363_v10 = vunpack.c.l.bf16 %v390_v3  ;;  %v364_v11 = vunpack.c.h.bf16 %v390_v3  ;;  %v367_v12 = vunpack.c.l.bf16 %v391_v8  ;;  %v368_v13 = vunpack.c.h.bf16 %v391_v8 }
  0x13   : > { %v197_v14 = vmul.f32 %v355_v4, %v333_v0  ;;  %v198_v15 = vmul.f32 %v356_v5, %v333_v0  ;;  %v199_v16 = vmul.f32 %v359_v6, %v333_v0  ;;  %v200_v17 = vmul.f32 %v360_v7, %v333_v0 }
  0x14   : > { %v201_v18 = vmul.f32 %v363_v10, %v333_v0  ;;  %v202_v19 = vmul.f32 %v364_v11, %v333_v0  ;;  %v203_v20 = vmul.f32 %v367_v12, %v333_v0  ;;  %v204_v21 = vmul.f32 %v368_v13, %v333_v0 }
  0x15   : > { %v212_v22 = vadd.f32 %v334_v9, %v197_v14  ;;  %v213_v23 = vadd.f32 %v334_v9, %v198_v15  ;;  %v214_v24 = vadd.f32 %v334_v9, %v199_v16  ;;  %v215_v25 = vadd.f32 %v334_v9, %v200_v17 }
  0x16   : > { %v216_v26 = vadd.f32 %v334_v9, %v201_v18  ;;  %v217_v27 = vadd.f32 %v334_v9, %v202_v19  ;;  %v218_v28 = vadd.f32 %v334_v9, %v203_v20  ;;  %v219_v29 = vadd.f32 %v334_v9, %v204_v21 }
  0x17   : > { %v220_v30 = vmax.f32 %v212_v22, 0.0  ;;  %v221_v31 = vmax.f32 %v213_v23, 0.0  ;;  %v222_v32 = vmax.f32 %v214_v24, 0.0  ;;  %v223_v33 = vmax.f32 %v215_v25, 0.0 }
  0x18   : > { %v224_v34 = vmax.f32 %v216_v26, 0.0  ;;  %v225_v35 = vmax.f32 %v217_v27, 0.0  ;;  %v226_v36 = vmax.f32 %v218_v28, 0.0  ;;  %v227_v37 = vmax.f32 %v219_v29, 0.0 }
  0x19   : > { %v372_v38 = vpack.c.bf16 %v221_v31, %v220_v30  ;;  %v377_v39 = vpack.c.bf16 %v223_v33, %v222_v32 }
  0x1a   : > { %v382_v40 = vpack.c.bf16 %v225_v35, %v224_v34  ;;  %v387_v41 = vpack.c.bf16 %v227_v37, %v226_v36 }
  0x1b   : > { %373 = vst [vmem:[%s172_s25] sm:$0xff] %v372_v38   ;;  %392 = vst [vmem:[%s172_s25 + $0x8] sm:$0xff] %v377_v39  }
  0x1c   : > { %393 = vst [vmem:[%s172_s25 + $0x10] sm:$0xff] %v382_v40   ;;  %394 = vst [vmem:[%s172_s25 + $0x18] sm:$0xff] %v387_v41  }
  0x1d PF: > { %s13_s12 = sadd.s32 1, %s409_s12  }
  0x1e   : > { %p10_p4 = scmp.ge.s32.totalorder %s13_s12, 4  }
  0x20   :  { %12 = sbr.rel (!%p10_p4) target bundleno = 1 (0x1), region = 62 }

// kernel: basic_block_forward.6
= control target key start
LH: loop header
LB: loop body
LE: loop exit
PB: predicated region body
PF: predicated region fallthrough
CT: control target
= control target key end

     0   :  { %s673_s12 = smov 0   ;;  %s735_s0 = inlined_call_operand.vmem [shape: bf16[128,128], index: 0, kind: input, shape index: {}]   ;;  %s736_s1 = inlined_call_operand.vmem [shape: bf16[128,128], index: 1, kind: input, shape index: {}]   ;;  %s737_s2 = inlined_call_operand.vmem [shape: bf16[128,128], index: 2, kind: output, shape index: {0}]   ;;  %s738_s3 = inlined_call_operand.vmem [shape: f32[2,2,128], index: 3, kind: output, shape index: {1}]  }
   0x1 LB: > { %s679_s13 = sadd.s32 4294967295, %s651_s12   ;;  %p514_p0 = scmp.ge.s32.totalorder %s651_s12, 1  ;;  %s651_s12 = sphi %s673_s12, %s14_s12  }
   0x2   : > { %p141_p1 = scmp.lt.s32.totalorder %s651_s12, 3 }
   0x4   : > { %p142_p2 = pnand %p514_p0, %p141_p1 }
   0x5   : > { %v633_v0 = vld [vmem:[%s736_s1] sm:$0xff] (!%p142_p2)   ;;  %s515_s16 = sshll.u32 (!%p142_p2), %s679_s13, 3  ;;  %v634_v1 = vld [vmem:[%s736_s1 + $0x8] sm:$0xff] (!%p142_p2)   ;;  %v635_v2 = vld [vmem:[%s736_s1 + $0x10] sm:$0xff] (!%p142_p2)   ;;  %p181_p4 = scmp.lt.s32.totalorder (!%p142_p2), %s679_s13, 1 }
   0x6   : > { %145 = sbr.rel (%p142_p2) target bundleno = 282 (0x11a), region = 28  ;;  %p170_p3 = scmp.lt.s32.totalorder (!%p142_p2), %s515_s16, 15  ;;  %585 = vmatprep.subr.bf16.mxu0 (!%p142_p2), %v633_v0  ;;  %609 = vmatprep.subr.bf16.mxu1 (!%p142_p2), %v633_v0  ;;  %v636_v3 = vld [vmem:[%s736_s1 + $0x18] sm:$0xff] (!%p142_p2)   ;;  %v637_v6 = vld [vmem:[%s736_s1 + $0x20] sm:$0xff] (!%p142_p2)   ;;  %v638_v7 = vld [vmem:[%s736_s1 + $0x28] sm:$0xff] (!%p142_p2)  }
   0x7   : > { %586 = vmatpush3.bf16.msra.mxu0 (!%p142_p2), %v633_v0  ;;  %617 = vmatpush3.bf16.msra.mxu1 (!%p142_p2), %v633_v0  ;;  %v639_v8 = vld [vmem:[%s736_s1 + $0x30] sm:$0xff] (!%p142_p2)   ;;  %v640_v9 = vld [vmem:[%s736_s1 + $0x38] sm:$0xff] (!%p142_p2)  }
   0x8   : > { %587 = vmatprep.subr.bf16.mxu0 (!%p142_p2), %v634_v1  ;;  %610 = vmatprep.subr.bf16.mxu1 (!%p142_p2), %v634_v1 }
   0xb   : > { %588 = vmatpush3.bf16.msra.mxu0 (!%p142_p2), %v634_v1  ;;  %618 = vmatpush3.bf16.msra.mxu1 (!%p142_p2), %v634_v1 }
   0xc   : > { %589 = vmatprep.subr.bf16.mxu0 (!%p142_p2), %v635_v2  ;;  %611 = vmatprep.subr.bf16.mxu1 (!%p142_p2), %v635_v2 }
   0xd   : > { %s740_s16 = smov (!%p170_p3, %s515_s16), 15  ;;  %s742_s13 = smov (!%p181_p4, %s679_s13), 1 }
   0xe   : > { %s516_s21 = sshll.u32 %s740_s16, 2  ;;  %s519_s11 = sshll.u32 %s742_s13, 1 }
   0xf   : > { %s701_s24 = scalar_lea.vmem %s735_s0, %s516_s21  ;;  %590 = vmatpush3.bf16.msra.mxu0 %v635_v2  ;;  %619 = vmatpush3.bf16.msra.mxu1 %v635_v2  ;;  %s179_s10 = scalar_lea.vmem %s737_s2, %s516_s21 }
  0x10   : > { %v641_v4 = vld [vmem:[%s701_s24] sm:$0xff]   ;;  %v643_v5 = vld [vmem:[%s701_s24 + $0x10] sm:$0xff]   ;;  %591 = vmatprep.subr.bf16.mxu0 %v636_v3  ;;  %612 = vmatprep.subr.bf16.mxu1 %v636_v3  ;;  %v642_v10 = vld [vmem:[%s701_s24 + $0x8] sm:$0xff]   ;;  %s184_s16 = scalar_lea.vmem %s738_s3, %s519_s11 }
  0x11   : > { %601 = vmatprep.mubr.bf16.mxu0 %v641_v4  ;;  %605 = vmatprep.mubr.bf16.mxu1 %v643_v5  ;;  %v644_v11 = vld [vmem:[%s701_s24 + $0x18] sm:$0xff]  }
  0x13   : > { %592 = vmatpush3.bf16.msra.mxu0 %v636_v3  ;;  %620 = vmatpush3.bf16.msra.mxu1 %v636_v3 }
  0x14   : > { %593 = vmatprep.subr.bf16.mxu0 %v637_v6  ;;  %613 = vmatprep.subr.bf16.mxu1 %v637_v6 }
  0x17   : > { %594 = vmatpush3.bf16.msra.mxu0 %v637_v6  ;;  %621 = vmatpush3.bf16.msra.mxu1 %v637_v6 }
  0x18   : > { %595 = vmatprep.subr.bf16.mxu0 %v638_v7  ;;  %614 = vmatprep.subr.bf16.mxu1 %v638_v7 }
  0x1b   : > { %596 = vmatpush3.bf16.msra.mxu0 %v638_v7  ;;  %622 = vmatpush3.bf16.msra.mxu1 %v638_v7 }
  0x1c   : > { %597 = vmatprep.subr.bf16.mxu0 %v639_v8  ;;  %615 = vmatprep.subr.bf16.mxu1 %v639_v8 }
  0x1f   : > { %598 = vmatpush3.bf16.msra.mxu0 %v639_v8  ;;  %623 = vmatpush3.bf16.msra.mxu1 %v639_v8 }
  0x20   : > { %599 = vmatprep.subr.bf16.mxu0 %v640_v9  ;;  %616 = vmatprep.subr.bf16.mxu1 %v640_v9 }
  0x23   : > { %600 = vmatpush3.bf16.msra.mxu0 %v640_v9  ;;  %624 = vmatpush3.bf16.msra.mxu1 %v640_v9 }
  0x26   : > { %602 = vmatmul.mubr.bf16.vlgmr.msra.gmra.mrb[0].mxu0 %v642_v10  ;;  %606 = vmatmul.mubr.bf16.vlgmr.msra.gmra.mrb[0].mxu1 %v644_v11 }
  0xf9   : > { %v603_v12 = vpop.f32.mrb[0].mxu0  ;;  %v607_v13 = vpop.f32.mrb[0].mxu1 }
  0xfa   : > { %v316_v14 = vpop.f32.mrb[1].mxu0  ;;  %v332_v15 = vpop.f32.mrb[1].mxu1  ;;  %v402_v27 = vmul.f32 %v603_v12, %v603_v12  ;;  %v406_v39 = vmul.f32 %v607_v13, %v607_v13 }
  0xfb   : > { %v604_v16 = vpop.f32.mrb[2].mxu0  ;;  %v608_v17 = vpop.f32.mrb[2].mxu1  ;;  %v400_v18 = vmul.f32 %v316_v14, %v316_v14  ;;  %v404_v33 = vmul.f32 %v332_v15, %v332_v15 }
  0xfc   : > { %v558_v19 = vpack.c.bf16 %v604_v16, %v603_v12  ;;  %v319_v20 = vpop.f32.mrb[3].mxu0  ;;  %v568_v21 = vpack.c.bf16 %v608_v17, %v607_v13  ;;  %v335_v22 = vpop.f32.mrb[3].mxu1  ;;  %v403_v30 = vmul.f32 %v604_v16, %v604_v16  ;;  %v407_v42 = vmul.f32 %v608_v17, %v608_v17 }
  0xfd   : > { %v553_v23 = vpack.c.bf16 %v319_v20, %v316_v14  ;;  %v387_v24 = vadd.f32 %v319_v20, %v316_v14  ;;  %v401_v25 = vmul.f32 %v319_v20, %v319_v20  ;;  %v563_v26 = vpack.c.bf16 %v335_v22, %v332_v15 }
  0xfe   : > { %570 = vst [vmem:[%s179_s10 + $0x8] sm:$0xff] %v558_v19   ;;  %572 = vst [vmem:[%s179_s10 + $0x18] sm:$0xff] %v568_v21   ;;  %v405_v38 = vmul.f32 %v335_v22, %v335_v22 }
  0xff   : > { %554 = vst [vmem:[%s179_s10] sm:$0xff] %v553_v23   ;;  %v388_v28 = vadd.f32 %v603_v12, %v387_v24  ;;  %v408_v29 = vadd.f32 %v401_v25, %v400_v18  ;;  %571 = vst [vmem:[%s179_s10 + $0x10] sm:$0xff] %v563_v26  }
 0x101   : > { %v409_v31 = vadd.f32 %v408_v29, %v402_v27  ;;  %v389_v32 = vadd.f32 %v604_v16, %v388_v28 }
 0x103   : > { %v390_v34 = vadd.f32 %v389_v32, %v332_v15  ;;  %v410_v35 = vadd.f32 %v409_v31, %v403_v30 }
 0x105   : > { %v411_v36 = vadd.f32 %v410_v35, %v404_v33  ;;  %v391_v37 = vadd.f32 %v390_v34, %v335_v22 }
 0x107   : > { %v392_v40 = vadd.f32 %v607_v13, %v391_v37  ;;  %v412_v41 = vadd.f32 %v411_v36, %v405_v38 }
 0x109   : > { %v393_v43 = vadd.f32 %v608_v17, %v392_v40  ;;  %v413_v44 = vadd.f32 %v412_v41, %v406_v39 }
 0x10b   : > { %v394_v45 = vrot.slane %v393_v43, 4  ;;  %v414_v46 = vadd.f32 %v413_v44, %v407_v42 }
 0x10d   : > { %v395_v47 = vadd.f32 %v394_v45, %v393_v43  ;;  %v415_v48 = vrot.slane %v414_v46, 4 }
 0x10f   : > { %v396_v49 = vrot.slane %v395_v47, 2  ;;  %v416_v50 = vadd.f32 %v415_v48, %v414_v46 }
 0x111   : > { %v397_v51 = vadd.f32 %v396_v49, %v395_v47  ;;  %v417_v52 = vrot.slane %v416_v50, 2 }
 0x113   : > { %v398_v53 = vrot.slane %v397_v51, 1  ;;  %v418_v54 = vadd.f32 %v417_v52, %v416_v50 }
 0x115   : > { %v399_v55 = vadd.f32 %v398_v53, %v397_v51  ;;  %v419_v56 = vrot.slane %v418_v54, 1 }
 0x117   : > { %v420_v57 = vadd.f32 %v419_v56, %v418_v54  ;;  %421 = vst [vmem:[%s184_s16] sm:$0x1] %v399_v55 }
 0x119   : > { %422 = vst [vmem:[%s184_s16 + $0x1] sm:$0x1] %v420_v57 }
 0x11a PF: > { %s14_s12 = sadd.s32 1, %s651_s12  }
 0x11b   : > { %p11_p5 = scmp.ge.s32.totalorder %s14_s12, 4  }
 0x11d   :  { %13 = sbr.rel (!%p11_p5) target bundleno = 1 (0x1), region = 70 }

// kernel: basic_block_forward.11
= control target key start
LH: loop header
LB: loop body
LE: loop exit
PB: predicated region body
PF: predicated region fallthrough
CT: control target
= control target key end

     0   :  { %s471_s15 = smov 0   ;;  %s501_s0 = inlined_call_operand.vmem [shape: bf16[128,128], index: 0, kind: input, shape index: {}]   ;;  %s502_s1 = inlined_call_operand.vmem [shape: f32[1,128], index: 1, kind: input, shape index: {}]   ;;  %s503_s2 = inlined_call_operand.vmem [shape: f32[1,128], index: 2, kind: input, shape index: {}]   ;;  %s504_s3 = inlined_call_operand.vmem [shape: bf16[128,128], index: 3, kind: input, shape index: {}]   ;;  %s505_s4 = inlined_call_operand.vmem [shape: f32[128,128], index: 4, kind: output, shape index: {}]  }
   0x1 LB: > { %s377_s16 = sadd.s32 4294967295, %s444_s15   ;;  %p381_p0 = scmp.ge.s32.totalorder %s444_s15, 1  ;;  %s444_s15 = sphi %s471_s15, %s14_s15  }
   0x2   : > { %p174_p1 = scmp.lt.s32.totalorder %s444_s15, 3 }
   0x4   : > { %p175_p2 = pnand %p381_p0, %p174_p1 }
   0x5   : > { %s382_s17 = sshll.u32 (!%p175_p2), %s377_s16, 3  ;;  %v388_v0 = vld [vmem:[%s502_s1] ss:$0 sm:$0xff] (!%p175_p2) }
   0x6   : > { %178 = sbr.rel (%p175_p2) target bundleno = 35 (0x23), region = 36  ;;  %p206_p3 = scmp.lt.s32.totalorder (!%p175_p2), %s382_s17, 15  ;;  %v389_v11 = vld [vmem:[%s503_s2] ss:$0 sm:$0xff] (!%p175_p2) }
   0xd   : > { %s507_s17 = smov (!%p206_p3, %s382_s17), 15 }
   0xe   : > { %s383_s18 = sshll.u32 %s507_s17, 2  ;;  %s387_s29 = sshll.u32 %s507_s17, 3 }
   0xf   : > { %s209_s21 = scalar_lea.vmem %s501_s0, %s383_s18  ;;  %s215_s24 = scalar_lea.vmem %s504_s3, %s383_s18 }
  0x10   : > { %v393_v1 = vld [vmem:[%s209_s21] sm:$0xff]   ;;  %v424_v3 = vld [vmem:[%s209_s21 + $0x8] sm:$0xff]   ;;  %v425_v9 = vld [vmem:[%s209_s21 + $0x10] sm:$0xff]   ;;  %s221_s6 = scalar_lea.vmem %s505_s4, %s387_s29 }
  0x11   : > { %v409_v2 = vld [vmem:[%s215_s24] sm:$0xff]   ;;  %v394_v4 = vunpack.c.l.bf16 %v393_v1  ;;  %v395_v6 = vunpack.c.h.bf16 %v393_v1  ;;  %v427_v8 = vld [vmem:[%s215_s24 + $0x8] sm:$0xff]   ;;  %v428_v10 = vld [vmem:[%s215_s24 + $0x10] sm:$0xff]   ;;  %v398_v12 = vunpack.c.l.bf16 %v424_v3  ;;  %v399_v14 = vunpack.c.h.bf16 %v424_v3 }
  0x12   : > { %v410_v5 = vunpack.c.l.bf16 %v409_v2  ;;  %v411_v7 = vunpack.c.h.bf16 %v409_v2  ;;  %v414_v13 = vunpack.c.l.bf16 %v427_v8  ;;  %v415_v15 = vunpack.c.h.bf16 %v427_v8  ;;  %v426_v16 = vld [vmem:[%s209_s21 + $0x18] sm:$0xff]  }
  0x13   : > { %v246_v17 = vmul.f32 %v394_v4, %v388_v0  ;;  %v247_v18 = vmul.f32 %v395_v6, %v388_v0  ;;  %v402_v19 = vunpack.c.l.bf16 %v425_v9  ;;  %v418_v20 = vunpack.c.l.bf16 %v428_v10  ;;  %v429_v21 = vld [vmem:[%s215_s24 + $0x18] sm:$0xff]  }
  0x14   : > { %v248_v22 = vmul.f32 %v398_v12, %v388_v0  ;;  %v249_v23 = vmul.f32 %v399_v14, %v388_v0  ;;  %v403_v24 = vunpack.c.h.bf16 %v425_v9  ;;  %v419_v25 = vunpack.c.h.bf16 %v428_v10 }
  0x15   : > { %v261_v26 = vadd.f32 %v389_v11, %v246_v17  ;;  %v262_v27 = vadd.f32 %v389_v11, %v247_v18  ;;  %v250_v28 = vmul.f32 %v402_v19, %v388_v0  ;;  %v406_v29 = vunpack.c.l.bf16 %v426_v16 }
  0x16   : > { %v263_v30 = vadd.f32 %v389_v11, %v248_v22  ;;  %v264_v31 = vadd.f32 %v389_v11, %v249_v23  ;;  %v251_v32 = vmul.f32 %v403_v24, %v388_v0  ;;  %v422_v33 = vunpack.c.l.bf16 %v429_v21 }
  0x17   : > { %v285_v34 = vadd.f32 %v410_v5, %v261_v26  ;;  %v286_v35 = vadd.f32 %v411_v7, %v262_v27  ;;  %v265_v36 = vadd.f32 %v389_v11, %v250_v28  ;;  %v252_v37 = vmul.f32 %v406_v29, %v388_v0 }
  0x18   : > { %v287_v38 = vadd.f32 %v414_v13, %v263_v30  ;;  %v288_v39 = vadd.f32 %v415_v15, %v264_v31  ;;  %v266_v40 = vadd.f32 %v389_v11, %v251_v32  ;;  %v407_v41 = vunpack.c.h.bf16 %v426_v16 }
  0x19   : > { %v293_v42 = vmax.f32 %v285_v34, 0.0  ;;  %v294_v43 = vmax.f32 %v286_v35, 0.0  ;;  %v289_v44 = vadd.f32 %v418_v20, %v265_v36  ;;  %v267_v45 = vadd.f32 %v389_v11, %v252_v37 }
  0x1a   : > { %v295_v46 = vmax.f32 %v287_v38, 0.0  ;;  %v296_v47 = vmax.f32 %v288_v39, 0.0  ;;  %v290_v48 = vadd.f32 %v419_v25, %v266_v40  ;;  %v253_v49 = vmul.f32 %v407_v41, %v388_v0 }
  0x1b   : > { %301 = vst [vmem:[%s221_s6] sm:$0xff] %v293_v42  ;;  %302 = vst [vmem:[%s221_s6 + $0x8] sm:$0xff] %v294_v43  ;;  %v297_v50 = vmax.f32 %v289_v44, 0.0  ;;  %v291_v51 = vadd.f32 %v422_v33, %v267_v45  ;;  %v423_v52 = vunpack.c.h.bf16 %v429_v21 }
  0x1c   : > { %303 = vst [vmem:[%s221_s6 + $0x10] sm:$0xff] %v295_v46  ;;  %304 = vst [vmem:[%s221_s6 + $0x18] sm:$0xff] %v296_v47  ;;  %v298_v53 = vmax.f32 %v290_v48, 0.0  ;;  %v268_v54 = vadd.f32 %v389_v11, %v253_v49 }
  0x1d   : > { %305 = vst [vmem:[%s221_s6 + $0x20] sm:$0xff] %v297_v50  ;;  %v299_v55 = vmax.f32 %v291_v51, 0.0 }
  0x1e   : > { %306 = vst [vmem:[%s221_s6 + $0x28] sm:$0xff] %v298_v53  ;;  %v292_v56 = vadd.f32 %v423_v52, %v268_v54 }
  0x1f   : > { %307 = vst [vmem:[%s221_s6 + $0x30] sm:$0xff] %v299_v55 }
  0x20   : > { %v300_v57 = vmax.f32 %v292_v56, 0.0 }
  0x22   : > { %308 = vst [vmem:[%s221_s6 + $0x38] sm:$0xff] %v300_v57 }
  0x23 PF: > { %s14_s15 = sadd.s32 1, %s444_s15  }
  0x24   : > { %p11_p4 = scmp.ge.s32.totalorder %s14_s15, 4  }
  0x26   :  { %13 = sbr.rel (!%p11_p4) target bundleno = 1 (0x1), region = 69 }

// kernel: basic_block_forward.9
= control target key start
LH: loop header
LB: loop body
LE: loop exit
PB: predicated region body
PF: predicated region fallthrough
CT: control target
= control target key end

     0   :  { %s423_s12 = smov 0   ;;  %s449_s0 = inlined_call_operand.vmem [shape: bf16[128,128], index: 0, kind: input, shape index: {}]   ;;  %s450_s1 = inlined_call_operand.vmem [shape: f32[1,128], index: 1, kind: input, shape index: {}]   ;;  %s451_s2 = inlined_call_operand.vmem [shape: f32[1,128], index: 2, kind: input, shape index: {}]   ;;  %s452_s3 = inlined_call_operand.vmem [shape: bf16[128,128], index: 3, kind: output, shape index: {}]  }
   0x1 LB: > { %s316_s13 = sadd.s32 4294967295, %s401_s12   ;;  %p320_p0 = scmp.ge.s32.totalorder %s401_s12, 1  ;;  %s401_s12 = sphi %s423_s12, %s13_s12  }
   0x2   : > { %p138_p1 = scmp.lt.s32.totalorder %s401_s12, 3 }
   0x4   : > { %p139_p2 = pnand %p320_p0, %p138_p1 }
   0x5   : > { %s321_s14 = sshll.u32 (!%p139_p2), %s316_s13, 3  ;;  %v325_v0 = vld [vmem:[%s450_s1] ss:$0 sm:$0xff] (!%p139_p2) }
   0x6   : > { %142 = sbr.rel (%p139_p2) target bundleno = 27 (0x1b), region = 32  ;;  %p163_p3 = scmp.lt.s32.totalorder (!%p139_p2), %s321_s14, 15  ;;  %v326_v9 = vld [vmem:[%s451_s2] ss:$0 sm:$0xff] (!%p139_p2) }
   0xd   : > { %s454_s14 = smov (!%p163_p3, %s321_s14), 15 }
   0xe   : > { %s322_s15 = sshll.u32 %s454_s14, 2 }
   0xf   : > { %s166_s18 = scalar_lea.vmem %s449_s0, %s322_s15  ;;  %s172_s25 = scalar_lea.vmem %s452_s3, %s322_s15 }
  0x10   : > { %v346_v1 = vld [vmem:[%s166_s18] sm:$0xff]   ;;  %v381_v2 = vld [vmem:[%s166_s18 + $0x8] sm:$0xff]   ;;  %v382_v3 = vld [vmem:[%s166_s18 + $0x10] sm:$0xff]  }
  0x11   : > { %v347_v4 = vunpack.c.l.bf16 %v346_v1  ;;  %v348_v5 = vunpack.c.h.bf16 %v346_v1  ;;  %v351_v6 = vunpack.c.l.bf16 %v381_v2  ;;  %v352_v7 = vunpack.c.h.bf16 %v381_v2  ;;  %v383_v8 = vld [vmem:[%s166_s18 + $0x18] sm:$0xff]  }
  0x12   : > { %v355_v10 = vunpack.c.l.bf16 %v382_v3  ;;  %v356_v11 = vunpack.c.h.bf16 %v382_v3  ;;  %v359_v12 = vunpack.c.l.bf16 %v383_v8  ;;  %v360_v13 = vunpack.c.h.bf16 %v383_v8 }
  0x13   : > { %v197_v14 = vmul.f32 %v347_v4, %v325_v0  ;;  %v198_v15 = vmul.f32 %v348_v5, %v325_v0  ;;  %v199_v16 = vmul.f32 %v351_v6, %v325_v0  ;;  %v200_v17 = vmul.f32 %v352_v7, %v325_v0 }
  0x14   : > { %v201_v18 = vmul.f32 %v355_v10, %v325_v0  ;;  %v202_v19 = vmul.f32 %v356_v11, %v325_v0  ;;  %v203_v20 = vmul.f32 %v359_v12, %v325_v0  ;;  %v204_v21 = vmul.f32 %v360_v13, %v325_v0 }
  0x15   : > { %v212_v22 = vadd.f32 %v326_v9, %v197_v14  ;;  %v213_v23 = vadd.f32 %v326_v9, %v198_v15  ;;  %v214_v24 = vadd.f32 %v326_v9, %v199_v16  ;;  %v215_v25 = vadd.f32 %v326_v9, %v200_v17 }
  0x16   : > { %v216_v26 = vadd.f32 %v326_v9, %v201_v18  ;;  %v217_v27 = vadd.f32 %v326_v9, %v202_v19  ;;  %v218_v28 = vadd.f32 %v326_v9, %v203_v20  ;;  %v219_v29 = vadd.f32 %v326_v9, %v204_v21 }
  0x17   : > { %v364_v30 = vpack.c.bf16 %v213_v23, %v212_v22  ;;  %v369_v31 = vpack.c.bf16 %v215_v25, %v214_v24 }
  0x18   : > { %v374_v32 = vpack.c.bf16 %v217_v27, %v216_v26  ;;  %v379_v33 = vpack.c.bf16 %v219_v29, %v218_v28 }
  0x19   : > { %365 = vst [vmem:[%s172_s25] sm:$0xff] %v364_v30   ;;  %384 = vst [vmem:[%s172_s25 + $0x8] sm:$0xff] %v369_v31  }
  0x1a   : > { %385 = vst [vmem:[%s172_s25 + $0x10] sm:$0xff] %v374_v32   ;;  %386 = vst [vmem:[%s172_s25 + $0x18] sm:$0xff] %v379_v33  }
  0x1b PF: > { %s13_s12 = sadd.s32 1, %s401_s12  }
  0x1c   : > { %p10_p4 = scmp.ge.s32.totalorder %s13_s12, 4  }
  0x1e   :  { %12 = sbr.rel (!%p10_p4) target bundleno = 1 (0x1), region = 62 }

</bundles_post_ra>
